<compile_context>
chip_gen: v5e
topology: v5e:2x2
jax: 0.10.0
libtpu: 0.0.40
codegen_flags: <defaults>
</compile_context>

<pallas_src>
import jax
import jax.numpy as jnp
from jax.experimental import pallas as pl
from jax.experimental.pallas import tpu as pltpu

INPUT_SIZE = 50
HIDDEN_SIZE = 64
FC1_SIZE = 32
NUM_CLASSES = 2

# Hardware-tile padded sizes.
B_ALIGN = 8      # sublane
I_PAD = 128      # lane (input features 50 -> 128)
F1_PAD = 128     # fc1 width 32 -> 128
C_PAD = 128      # classes 2 -> 128 (lane-dense output store)


def lstm_classifier_kernel(x_ref, wih_ref, whh_ref, b_ref,
                           w1_ref, b1_ref, w2_ref, b2_ref, out_ref):
    """Whole forward pass in one kernel (no grid; everything resident in VMEM).

    x_ref   : (T, B_pad, I_PAD)   bf16, time-major, zero-padded input
    wih_ref : (I_PAD, 4*H)        bf16, W_ih^T, gate order [i|f|o|g]
    whh_ref : (H, 4*H)            bf16, W_hh^T, gate order [i|f|o|g]
    b_ref   : (1, 4*H)            f32,  b_ih + b_hh, gate order [i|f|o|g]
    w1_ref  : (H, F1_PAD)   b1_ref : (1, F1_PAD)      f32
    w2_ref  : (F1_PAD, C_PAD) b2_ref : (1, C_PAD)     f32
    out_ref : (B_pad, C_PAD)      f32, lane-dense padded logits
    """
    T, B, I = x_ref.shape
    H = whh_ref.shape[0]          # native hidden size (64)
    H2 = 2 * H                    # one 128-lane gate group

    # ---- Hoisted input projection: one MXU matmul for all timesteps; bias
    # broadcast folded in exactly once (outside the serial recurrence).
    x_all = x_ref[...].reshape(T * B, I)                          # (T*B, I_PAD) bf16
    x_proj = jnp.dot(x_all, wih_ref[...],
                     preferred_element_type=jnp.float32)          # (T*B, 4*H) f32
    x_proj = x_proj + b_ref[...]

    whh = whh_ref[...]                                            # bf16 (H, 4*H)
    h = jnp.zeros((B, H), jnp.float32)
    c = jnp.zeros((B, H), jnp.float32)

    # Static lane mask for the mixed [o | g] group: lanes < H are o (sigmoid),
    # lanes >= H are g (tanh).  Hoisted out of the loop.
    lane = jax.lax.broadcasted_iota(jnp.int32, (B, H2), 1)
    is_o = lane < H

    # ---- Recurrence: statically unrolled (T is a compile-time constant).
    # Only dot(h_bf16, W_hh_bf16) sits on the serial chain.
    for t in range(T):
        gates = x_proj[t * B:(t + 1) * B, :] + jnp.dot(
            h.astype(jnp.bfloat16), whh,
            preferred_element_type=jnp.float32)                   # (B, 4*H) f32

        if_grp = gates[:, :H2]          # [i | f] -- both sigmoid
        og_grp = gates[:, H2:]          # [o | g] -- sigmoid | tanh

        # sigmoid(x) = 0.5 * tanh(0.5 * x) + 0.5  (one EUP push, not exp+recip)
        if_act = 0.5 * jnp.tanh(0.5 * if_grp) + 0.5
        og_sig = 0.5 * jnp.tanh(0.5 * og_grp) + 0.5
        og_tanh = jnp.tanh(og_grp)
        og_act = jnp.where(is_o, og_sig, og_tanh)

        i_g = if_act[:, :H]
        f_g = if_act[:, H:]
        o_g = og_act[:, :H]
        g_g = og_act[:, H:]

        c = f_g * c + i_g * g_g
        h = o_g * jnp.tanh(c)

    # ---- dropout (identity) -> fc1 -> relu -> dropout (identity) -> fc2
    z = jnp.dot(h, w1_ref[...], preferred_element_type=jnp.float32) + b1_ref[...]
    z = jnp.maximum(z, 0.0)
    out_ref[...] = (jnp.dot(z, w2_ref[...], preferred_element_type=jnp.float32)
                    + b2_ref[...])


def _pack_gates(w):
    """Reorder PyTorch gate blocks (i, f, g, o) along axis 0 -> (i, f, o, g).

    The first 2H lanes (after transpose) are then pure-sigmoid gates and the
    last 2H lanes are the mixed [o | g] group handled with a lane mask.
    """
    i_, f_, g_, o_ = jnp.split(w, 4, axis=0)
    return jnp.concatenate([i_, f_, o_, g_], axis=0)


def prepare_params(params):
    """One-time weight preparation: gate re-order, transpose, pad, cast.

    Hoisted out of the forward path so per-call dispatch only pads x.
    """
    w_ih, w_hh, b_ih, b_hh, fc1_w, fc1_b, fc2_w, fc2_b = params
    H = w_hh.shape[1]
    I = w_ih.shape[1]
    F1 = fc1_w.shape[0]
    C = fc2_w.shape[0]

    w_ih_g = _pack_gates(w_ih)                                     # (4H, I)
    w_hh_g = _pack_gates(w_hh)                                     # (4H, H)
    b_g = _pack_gates((b_ih + b_hh).reshape(4 * H, 1)).reshape(1, 4 * H)

    # W_ih^T padded to (I_PAD, 4H), bf16 MXU operand.
    wih_p = jnp.zeros((I_PAD, 4 * H), jnp.float32).at[:I, :].set(
        jnp.transpose(w_ih_g).astype(jnp.float32)).astype(jnp.bfloat16)
    # W_hh^T: (H, 4H), bf16 (recurrent MXU operand on the serial chain).
    whh_p = jnp.transpose(w_hh_g).astype(jnp.bfloat16)
    b_p = b_g.astype(jnp.float32)

    # FC layers, zero-padded to lane-dense tiles (stay f32).
    w1_p = jnp.zeros((H, F1_PAD), jnp.float32).at[:, :F1].set(
        jnp.transpose(fc1_w).astype(jnp.float32))
    b1_p = jnp.zeros((1, F1_PAD), jnp.float32).at[:, :F1].set(
        fc1_b.reshape(1, -1).astype(jnp.float32))
    w2_p = jnp.zeros((F1_PAD, C_PAD), jnp.float32).at[:F1, :C].set(
        jnp.transpose(fc2_w).astype(jnp.float32))
    b2_p = jnp.zeros((1, C_PAD), jnp.float32).at[:, :C].set(
        fc2_b.reshape(1, -1).astype(jnp.float32))

    return (wih_p, whh_p, b_p, w1_p, b1_p, w2_p, b2_p)


@jax.jit
def lstm_classifier_forward(x, prepared):
    """x: (B, T, I) batch-first float32, matching the PyTorch module interface."""
    B, T, I = x.shape
    wih_p, whh_p, b_p, w1_p, b1_p, w2_p, b2_p = prepared
    B_pad = ((B + B_ALIGN - 1) // B_ALIGN) * B_ALIGN

    # Per-call work: zero-pad batch/feature dims, go time-major, cast to bf16.
    x_p = jnp.zeros((T, B_pad, I_PAD), jnp.bfloat16)
    x_p = x_p.at[:, :B, :I].set(jnp.transpose(x, (1, 0, 2)).astype(jnp.bfloat16))

    vmem = pl.BlockSpec(memory_space=pltpu.MemorySpace.VMEM)
    out_padded = pl.pallas_call(
        lstm_classifier_kernel,
        out_shape=jax.ShapeDtypeStruct((B_pad, C_PAD), jnp.float32),
        in_specs=[vmem] * 8,
        out_specs=vmem,
    )(x_p, wih_p, whh_p, b_p, w1_p, b1_p, w2_p, b2_p)

    return out_padded[:B, :NUM_CLASSES]


def reference_forward(x, params):
    """Pure-JAX f32 reference matching nn.LSTM + fc1/relu/fc2 (inference)."""
    w_ih, w_hh, b_ih, b_hh, fc1_w, fc1_b, fc2_w, fc2_b = params
    B, T, _ = x.shape
    H = w_hh.shape[1]
    h = jnp.zeros((B, H), jnp.float32)
    c = jnp.zeros((B, H), jnp.float32)
    for t in range(T):
        g = x[:, t, :] @ w_ih.T + h @ w_hh.T + b_ih + b_hh
        i_g = jax.nn.sigmoid(g[:, 0:H])
        f_g = jax.nn.sigmoid(g[:, H:2 * H])
        g_g = jnp.tanh(g[:, 2 * H:3 * H])
        o_g = jax.nn.sigmoid(g[:, 3 * H:4 * H])
        c = f_g * c + i_g * g_g
        h = o_g * jnp.tanh(c)
    z = jnp.maximum(h @ fc1_w.T + fc1_b, 0.0)
    return z @ fc2_w.T + fc2_b


def init_params(key):
    """Deterministic synthetic parameters with the module's shapes."""
    ks = jax.random.split(key, 8)
    H, I, C, F1 = HIDDEN_SIZE, INPUT_SIZE, NUM_CLASSES, FC1_SIZE
    scale = 0.1
    w_ih = scale * jax.random.normal(ks[0], (4 * H, I), jnp.float32)
    w_hh = scale * jax.random.normal(ks[1], (4 * H, H), jnp.float32)
    b_ih = scale * jax.random.normal(ks[2], (4 * H,), jnp.float32)
    b_hh = scale * jax.random.normal(ks[3], (4 * H,), jnp.float32)
    fc1_w = scale * jax.random.normal(ks[4], (F1, H), jnp.float32)
    fc1_b = scale * jax.random.normal(ks[5], (F1,), jnp.float32)
    fc2_w = scale * jax.random.normal(ks[6], (C, F1), jnp.float32)
    fc2_b = scale * jax.random.normal(ks[7], (C,), jnp.float32)
    return (w_ih, w_hh, b_ih, b_hh, fc1_w, fc1_b, fc2_w, fc2_b)


if __name__ == "__main__":
    key = jax.random.PRNGKey(0)
    k_x, k_p = jax.random.split(key)

    B, T = 2, 8
    x = jax.random.normal(k_x, (B, T, INPUT_SIZE), jnp.float32)
    params = init_params(k_p)
    prepared = prepare_params(params)          # one-time weight prep (hoisted)

    out = lstm_classifier_forward(x, prepared)
    jax.block_until_ready(out)
    assert out.shape == (B, NUM_CLASSES), out.shape

    ref = reference_forward(x, params)
    err = float(jnp.max(jnp.abs(out - ref)))
    assert err < 5e-2, f"max abs error vs reference too large: {err}"

    print("KERNEL_OK")
</pallas_src>

<mosaic_0001>
module attributes {stable_mosaic.version = 11 : i64} {
  func.func @lstm_classifier_kernel(%arg0: memref<8x8x128xbf16, #tpu.memory_space<vmem>>, %arg1: memref<128x256xbf16, #tpu.memory_space<vmem>>, %arg2: memref<64x256xbf16, #tpu.memory_space<vmem>>, %arg3: memref<1x256xf32, #tpu.memory_space<vmem>>, %arg4: memref<64x128xf32, #tpu.memory_space<vmem>>, %arg5: memref<1x128xf32, #tpu.memory_space<vmem>>, %arg6: memref<128x128xf32, #tpu.memory_space<vmem>>, %arg7: memref<1x128xf32, #tpu.memory_space<vmem>>, %arg8: memref<8x128xf32, #tpu.memory_space<vmem>>) attributes {dimension_semantics = [], scalar_prefetch = 0 : i64, scratch_operands = 0 : i64, tpu.core_type = #tpu.core_type<tc>} {
    %c0 = arith.constant 0 : index
    %c0_0 = arith.constant 0 : index
    %c0_1 = arith.constant 0 : index
    %0 = vector.load %arg0[%c0, %c0_0, %c0_1] : memref<8x8x128xbf16, #tpu.memory_space<vmem>>, vector<8x8x128xbf16>
    %1 = vector.shape_cast %0 : vector<8x8x128xbf16> to vector<64x128xbf16>
    %c0_2 = arith.constant 0 : index
    %c0_3 = arith.constant 0 : index
    %2 = vector.load %arg1[%c0_2, %c0_3] : memref<128x256xbf16, #tpu.memory_space<vmem>>, vector<128x256xbf16>
    %cst = arith.constant dense<0.000000e+00> : vector<64x256xf32>
    %3 = tpu.matmul %1, %2, %cst {dimension_numbers = #tpu.dot_dimension_numbers<[1], [0], [0], [1], [0, 0, 1, 1], [], []>} : vector<64x128xbf16>, vector<128x256xbf16>, vector<64x256xf32> -> vector<64x256xf32>
    %c0_4 = arith.constant 0 : index
    %c0_5 = arith.constant 0 : index
    %4 = vector.load %arg3[%c0_4, %c0_5] : memref<1x256xf32, #tpu.memory_space<vmem>>, vector<1x256xf32>
    %5 = vector.broadcast %4 : vector<1x256xf32> to vector<64x256xf32>
    %6 = arith.addf %3, %5 : vector<64x256xf32>
    %c0_6 = arith.constant 0 : index
    %c0_7 = arith.constant 0 : index
    %7 = vector.load %arg2[%c0_6, %c0_7] : memref<64x256xbf16, #tpu.memory_space<vmem>>, vector<64x256xbf16>
    %cst_8 = arith.constant 0.000000e+00 : f32
    %8 = vector.broadcast %cst_8 : f32 to vector<8x64xf32>
    %cst_9 = arith.constant 0.000000e+00 : f32
    %9 = vector.broadcast %cst_9 : f32 to vector<8x64xf32>
    %10 = tpu.iota {dimensions = array<i32: 1>} : vector<8x128xi32>
    %c64_i32 = arith.constant 64 : i32
    %11 = vector.broadcast %c64_i32 : i32 to vector<8x128xi32>
    %12 = arith.cmpi slt, %10, %11 : vector<8x128xi32>
    %13 = vector.extract_strided_slice %6 {offsets = [0, 0], sizes = [8, 256], strides = [1, 1]} : vector<64x256xf32> to vector<8x256xf32>
    %14 = arith.truncf %8 : vector<8x64xf32> to vector<8x64xbf16>
    %cst_10 = arith.constant dense<0.000000e+00> : vector<8x256xf32>
    %15 = tpu.matmul %14, %7, %cst_10 {dimension_numbers = #tpu.dot_dimension_numbers<[1], [0], [0], [1], [0, 0, 1, 1], [], []>} : vector<8x64xbf16>, vector<64x256xbf16>, vector<8x256xf32> -> vector<8x256xf32>
    %16 = arith.addf %13, %15 : vector<8x256xf32>
    %17 = vector.extract_strided_slice %16 {offsets = [0, 0], sizes = [8, 128], strides = [1, 1]} : vector<8x256xf32> to vector<8x128xf32>
    %18 = vector.extract_strided_slice %16 {offsets = [0, 128], sizes = [8, 128], strides = [1, 1]} : vector<8x256xf32> to vector<8x128xf32>
    %cst_11 = arith.constant 5.000000e-01 : f32
    %19 = vector.broadcast %cst_11 : f32 to vector<8x128xf32>
    %20 = arith.mulf %19, %17 : vector<8x128xf32>
    %21 = math.tanh %20 : vector<8x128xf32>
    %cst_12 = arith.constant 5.000000e-01 : f32
    %22 = vector.broadcast %cst_12 : f32 to vector<8x128xf32>
    %23 = arith.mulf %22, %21 : vector<8x128xf32>
    %cst_13 = arith.constant 5.000000e-01 : f32
    %24 = vector.broadcast %cst_13 : f32 to vector<8x128xf32>
    %25 = arith.addf %23, %24 : vector<8x128xf32>
    %cst_14 = arith.constant 5.000000e-01 : f32
    %26 = vector.broadcast %cst_14 : f32 to vector<8x128xf32>
    %27 = arith.mulf %26, %18 : vector<8x128xf32>
    %28 = math.tanh %27 : vector<8x128xf32>
    %cst_15 = arith.constant 5.000000e-01 : f32
    %29 = vector.broadcast %cst_15 : f32 to vector<8x128xf32>
    %30 = arith.mulf %29, %28 : vector<8x128xf32>
    %cst_16 = arith.constant 5.000000e-01 : f32
    %31 = vector.broadcast %cst_16 : f32 to vector<8x128xf32>
    %32 = arith.addf %30, %31 : vector<8x128xf32>
    %33 = math.tanh %18 : vector<8x128xf32>
    %34 = arith.select %12, %32, %33 : vector<8x128xi1>, vector<8x128xf32>
    %35 = vector.extract_strided_slice %25 {offsets = [0, 0], sizes = [8, 64], strides = [1, 1]} : vector<8x128xf32> to vector<8x64xf32>
    %36 = vector.extract_strided_slice %25 {offsets = [0, 64], sizes = [8, 64], strides = [1, 1]} : vector<8x128xf32> to vector<8x64xf32>
    %37 = vector.extract_strided_slice %34 {offsets = [0, 0], sizes = [8, 64], strides = [1, 1]} : vector<8x128xf32> to vector<8x64xf32>
    %38 = vector.extract_strided_slice %34 {offsets = [0, 64], sizes = [8, 64], strides = [1, 1]} : vector<8x128xf32> to vector<8x64xf32>
    %39 = arith.mulf %36, %9 : vector<8x64xf32>
    %40 = arith.mulf %35, %38 : vector<8x64xf32>
    %41 = arith.addf %39, %40 : vector<8x64xf32>
    %42 = math.tanh %41 : vector<8x64xf32>
    %43 = arith.mulf %37, %42 : vector<8x64xf32>
    %44 = vector.extract_strided_slice %6 {offsets = [8, 0], sizes = [8, 256], strides = [1, 1]} : vector<64x256xf32> to vector<8x256xf32>
    %45 = arith.truncf %43 : vector<8x64xf32> to vector<8x64xbf16>
    %cst_17 = arith.constant dense<0.000000e+00> : vector<8x256xf32>
    %46 = tpu.matmul %45, %7, %cst_17 {dimension_numbers = #tpu.dot_dimension_numbers<[1], [0], [0], [1], [0, 0, 1, 1], [], []>} : vector<8x64xbf16>, vector<64x256xbf16>, vector<8x256xf32> -> vector<8x256xf32>
    %47 = arith.addf %44, %46 : vector<8x256xf32>
    %48 = vector.extract_strided_slice %47 {offsets = [0, 0], sizes = [8, 128], strides = [1, 1]} : vector<8x256xf32> to vector<8x128xf32>
    %49 = vector.extract_strided_slice %47 {offsets = [0, 128], sizes = [8, 128], strides = [1, 1]} : vector<8x256xf32> to vector<8x128xf32>
    %cst_18 = arith.constant 5.000000e-01 : f32
    %50 = vector.broadcast %cst_18 : f32 to vector<8x128xf32>
    %51 = arith.mulf %50, %48 : vector<8x128xf32>
    %52 = math.tanh %51 : vector<8x128xf32>
    %cst_19 = arith.constant 5.000000e-01 : f32
    %53 = vector.broadcast %cst_19 : f32 to vector<8x128xf32>
    %54 = arith.mulf %53, %52 : vector<8x128xf32>
    %cst_20 = arith.constant 5.000000e-01 : f32
    %55 = vector.broadcast %cst_20 : f32 to vector<8x128xf32>
    %56 = arith.addf %54, %55 : vector<8x128xf32>
    %cst_21 = arith.constant 5.000000e-01 : f32
    %57 = vector.broadcast %cst_21 : f32 to vector<8x128xf32>
    %58 = arith.mulf %57, %49 : vector<8x128xf32>
    %59 = math.tanh %58 : vector<8x128xf32>
    %cst_22 = arith.constant 5.000000e-01 : f32
    %60 = vector.broadcast %cst_22 : f32 to vector<8x128xf32>
    %61 = arith.mulf %60, %59 : vector<8x128xf32>
    %cst_23 = arith.constant 5.000000e-01 : f32
    %62 = vector.broadcast %cst_23 : f32 to vector<8x128xf32>
    %63 = arith.addf %61, %62 : vector<8x128xf32>
    %64 = math.tanh %49 : vector<8x128xf32>
    %65 = arith.select %12, %63, %64 : vector<8x128xi1>, vector<8x128xf32>
    %66 = vector.extract_strided_slice %56 {offsets = [0, 0], sizes = [8, 64], strides = [1, 1]} : vector<8x128xf32> to vector<8x64xf32>
    %67 = vector.extract_strided_slice %56 {offsets = [0, 64], sizes = [8, 64], strides = [1, 1]} : vector<8x128xf32> to vector<8x64xf32>
    %68 = vector.extract_strided_slice %65 {offsets = [0, 0], sizes = [8, 64], strides = [1, 1]} : vector<8x128xf32> to vector<8x64xf32>
    %69 = vector.extract_strided_slice %65 {offsets = [0, 64], sizes = [8, 64], strides = [1, 1]} : vector<8x128xf32> to vector<8x64xf32>
    %70 = arith.mulf %67, %41 : vector<8x64xf32>
    %71 = arith.mulf %66, %69 : vector<8x64xf32>
    %72 = arith.addf %70, %71 : vector<8x64xf32>
    %73 = math.tanh %72 : vector<8x64xf32>
    %74 = arith.mulf %68, %73 : vector<8x64xf32>
    %75 = vector.extract_strided_slice %6 {offsets = [16, 0], sizes = [8, 256], strides = [1, 1]} : vector<64x256xf32> to vector<8x256xf32>
    %76 = arith.truncf %74 : vector<8x64xf32> to vector<8x64xbf16>
    %cst_24 = arith.constant dense<0.000000e+00> : vector<8x256xf32>
    %77 = tpu.matmul %76, %7, %cst_24 {dimension_numbers = #tpu.dot_dimension_numbers<[1], [0], [0], [1], [0, 0, 1, 1], [], []>} : vector<8x64xbf16>, vector<64x256xbf16>, vector<8x256xf32> -> vector<8x256xf32>
    %78 = arith.addf %75, %77 : vector<8x256xf32>
    %79 = vector.extract_strided_slice %78 {offsets = [0, 0], sizes = [8, 128], strides = [1, 1]} : vector<8x256xf32> to vector<8x128xf32>
    %80 = vector.extract_strided_slice %78 {offsets = [0, 128], sizes = [8, 128], strides = [1, 1]} : vector<8x256xf32> to vector<8x128xf32>
    %cst_25 = arith.constant 5.000000e-01 : f32
    %81 = vector.broadcast %cst_25 : f32 to vector<8x128xf32>
    %82 = arith.mulf %81, %79 : vector<8x128xf32>
    %83 = math.tanh %82 : vector<8x128xf32>
    %cst_26 = arith.constant 5.000000e-01 : f32
    %84 = vector.broadcast %cst_26 : f32 to vector<8x128xf32>
    %85 = arith.mulf %84, %83 : vector<8x128xf32>
    %cst_27 = arith.constant 5.000000e-01 : f32
    %86 = vector.broadcast %cst_27 : f32 to vector<8x128xf32>
    %87 = arith.addf %85, %86 : vector<8x128xf32>
    %cst_28 = arith.constant 5.000000e-01 : f32
    %88 = vector.broadcast %cst_28 : f32 to vector<8x128xf32>
    %89 = arith.mulf %88, %80 : vector<8x128xf32>
    %90 = math.tanh %89 : vector<8x128xf32>
    %cst_29 = arith.constant 5.000000e-01 : f32
    %91 = vector.broadcast %cst_29 : f32 to vector<8x128xf32>
    %92 = arith.mulf %91, %90 : vector<8x128xf32>
    %cst_30 = arith.constant 5.000000e-01 : f32
    %93 = vector.broadcast %cst_30 : f32 to vector<8x128xf32>
    %94 = arith.addf %92, %93 : vector<8x128xf32>
    %95 = math.tanh %80 : vector<8x128xf32>
    %96 = arith.select %12, %94, %95 : vector<8x128xi1>, vector<8x128xf32>
    %97 = vector.extract_strided_slice %87 {offsets = [0, 0], sizes = [8, 64], strides = [1, 1]} : vector<8x128xf32> to vector<8x64xf32>
    %98 = vector.extract_strided_slice %87 {offsets = [0, 64], sizes = [8, 64], strides = [1, 1]} : vector<8x128xf32> to vector<8x64xf32>
    %99 = vector.extract_strided_slice %96 {offsets = [0, 0], sizes = [8, 64], strides = [1, 1]} : vector<8x128xf32> to vector<8x64xf32>
    %100 = vector.extract_strided_slice %96 {offsets = [0, 64], sizes = [8, 64], strides = [1, 1]} : vector<8x128xf32> to vector<8x64xf32>
    %101 = arith.mulf %98, %72 : vector<8x64xf32>
    %102 = arith.mulf %97, %100 : vector<8x64xf32>
    %103 = arith.addf %101, %102 : vector<8x64xf32>
    %104 = math.tanh %103 : vector<8x64xf32>
    %105 = arith.mulf %99, %104 : vector<8x64xf32>
    %106 = vector.extract_strided_slice %6 {offsets = [24, 0], sizes = [8, 256], strides = [1, 1]} : vector<64x256xf32> to vector<8x256xf32>
    %107 = arith.truncf %105 : vector<8x64xf32> to vector<8x64xbf16>
    %cst_31 = arith.constant dense<0.000000e+00> : vector<8x256xf32>
    %108 = tpu.matmul %107, %7, %cst_31 {dimension_numbers = #tpu.dot_dimension_numbers<[1], [0], [0], [1], [0, 0, 1, 1], [], []>} : vector<8x64xbf16>, vector<64x256xbf16>, vector<8x256xf32> -> vector<8x256xf32>
    %109 = arith.addf %106, %108 : vector<8x256xf32>
    %110 = vector.extract_strided_slice %109 {offsets = [0, 0], sizes = [8, 128], strides = [1, 1]} : vector<8x256xf32> to vector<8x128xf32>
    %111 = vector.extract_strided_slice %109 {offsets = [0, 128], sizes = [8, 128], strides = [1, 1]} : vector<8x256xf32> to vector<8x128xf32>
    %cst_32 = arith.constant 5.000000e-01 : f32
    %112 = vector.broadcast %cst_32 : f32 to vector<8x128xf32>
    %113 = arith.mulf %112, %110 : vector<8x128xf32>
    %114 = math.tanh %113 : vector<8x128xf32>
    %cst_33 = arith.constant 5.000000e-01 : f32
    %115 = vector.broadcast %cst_33 : f32 to vector<8x128xf32>
    %116 = arith.mulf %115, %114 : vector<8x128xf32>
    %cst_34 = arith.constant 5.000000e-01 : f32
    %117 = vector.broadcast %cst_34 : f32 to vector<8x128xf32>
    %118 = arith.addf %116, %117 : vector<8x128xf32>
    %cst_35 = arith.constant 5.000000e-01 : f32
    %119 = vector.broadcast %cst_35 : f32 to vector<8x128xf32>
    %120 = arith.mulf %119, %111 : vector<8x128xf32>
    %121 = math.tanh %120 : vector<8x128xf32>
    %cst_36 = arith.constant 5.000000e-01 : f32
    %122 = vector.broadcast %cst_36 : f32 to vector<8x128xf32>
    %123 = arith.mulf %122, %121 : vector<8x128xf32>
    %cst_37 = arith.constant 5.000000e-01 : f32
    %124 = vector.broadcast %cst_37 : f32 to vector<8x128xf32>
    %125 = arith.addf %123, %124 : vector<8x128xf32>
    %126 = math.tanh %111 : vector<8x128xf32>
    %127 = arith.select %12, %125, %126 : vector<8x128xi1>, vector<8x128xf32>
    %128 = vector.extract_strided_slice %118 {offsets = [0, 0], sizes = [8, 64], strides = [1, 1]} : vector<8x128xf32> to vector<8x64xf32>
    %129 = vector.extract_strided_slice %118 {offsets = [0, 64], sizes = [8, 64], strides = [1, 1]} : vector<8x128xf32> to vector<8x64xf32>
    %130 = vector.extract_strided_slice %127 {offsets = [0, 0], sizes = [8, 64], strides = [1, 1]} : vector<8x128xf32> to vector<8x64xf32>
    %131 = vector.extract_strided_slice %127 {offsets = [0, 64], sizes = [8, 64], strides = [1, 1]} : vector<8x128xf32> to vector<8x64xf32>
    %132 = arith.mulf %129, %103 : vector<8x64xf32>
    %133 = arith.mulf %128, %131 : vector<8x64xf32>
    %134 = arith.addf %132, %133 : vector<8x64xf32>
    %135 = math.tanh %134 : vector<8x64xf32>
    %136 = arith.mulf %130, %135 : vector<8x64xf32>
    %137 = vector.extract_strided_slice %6 {offsets = [32, 0], sizes = [8, 256], strides = [1, 1]} : vector<64x256xf32> to vector<8x256xf32>
    %138 = arith.truncf %136 : vector<8x64xf32> to vector<8x64xbf16>
    %cst_38 = arith.constant dense<0.000000e+00> : vector<8x256xf32>
    %139 = tpu.matmul %138, %7, %cst_38 {dimension_numbers = #tpu.dot_dimension_numbers<[1], [0], [0], [1], [0, 0, 1, 1], [], []>} : vector<8x64xbf16>, vector<64x256xbf16>, vector<8x256xf32> -> vector<8x256xf32>
    %140 = arith.addf %137, %139 : vector<8x256xf32>
    %141 = vector.extract_strided_slice %140 {offsets = [0, 0], sizes = [8, 128], strides = [1, 1]} : vector<8x256xf32> to vector<8x128xf32>
    %142 = vector.extract_strided_slice %140 {offsets = [0, 128], sizes = [8, 128], strides = [1, 1]} : vector<8x256xf32> to vector<8x128xf32>
    %cst_39 = arith.constant 5.000000e-01 : f32
    %143 = vector.broadcast %cst_39 : f32 to vector<8x128xf32>
    %144 = arith.mulf %143, %141 : vector<8x128xf32>
    %145 = math.tanh %144 : vector<8x128xf32>
    %cst_40 = arith.constant 5.000000e-01 : f32
    %146 = vector.broadcast %cst_40 : f32 to vector<8x128xf32>
    %147 = arith.mulf %146, %145 : vector<8x128xf32>
    %cst_41 = arith.constant 5.000000e-01 : f32
    %148 = vector.broadcast %cst_41 : f32 to vector<8x128xf32>
    %149 = arith.addf %147, %148 : vector<8x128xf32>
    %cst_42 = arith.constant 5.000000e-01 : f32
    %150 = vector.broadcast %cst_42 : f32 to vector<8x128xf32>
    %151 = arith.mulf %150, %142 : vector<8x128xf32>
    %152 = math.tanh %151 : vector<8x128xf32>
    %cst_43 = arith.constant 5.000000e-01 : f32
    %153 = vector.broadcast %cst_43 : f32 to vector<8x128xf32>
    %154 = arith.mulf %153, %152 : vector<8x128xf32>
    %cst_44 = arith.constant 5.000000e-01 : f32
    %155 = vector.broadcast %cst_44 : f32 to vector<8x128xf32>
    %156 = arith.addf %154, %155 : vector<8x128xf32>
    %157 = math.tanh %142 : vector<8x128xf32>
    %158 = arith.select %12, %156, %157 : vector<8x128xi1>, vector<8x128xf32>
    %159 = vector.extract_strided_slice %149 {offsets = [0, 0], sizes = [8, 64], strides = [1, 1]} : vector<8x128xf32> to vector<8x64xf32>
    %160 = vector.extract_strided_slice %149 {offsets = [0, 64], sizes = [8, 64], strides = [1, 1]} : vector<8x128xf32> to vector<8x64xf32>
    %161 = vector.extract_strided_slice %158 {offsets = [0, 0], sizes = [8, 64], strides = [1, 1]} : vector<8x128xf32> to vector<8x64xf32>
    %162 = vector.extract_strided_slice %158 {offsets = [0, 64], sizes = [8, 64], strides = [1, 1]} : vector<8x128xf32> to vector<8x64xf32>
    %163 = arith.mulf %160, %134 : vector<8x64xf32>
    %164 = arith.mulf %159, %162 : vector<8x64xf32>
    %165 = arith.addf %163, %164 : vector<8x64xf32>
    %166 = math.tanh %165 : vector<8x64xf32>
    %167 = arith.mulf %161, %166 : vector<8x64xf32>
    %168 = vector.extract_strided_slice %6 {offsets = [40, 0], sizes = [8, 256], strides = [1, 1]} : vector<64x256xf32> to vector<8x256xf32>
    %169 = arith.truncf %167 : vector<8x64xf32> to vector<8x64xbf16>
    %cst_45 = arith.constant dense<0.000000e+00> : vector<8x256xf32>
    %170 = tpu.matmul %169, %7, %cst_45 {dimension_numbers = #tpu.dot_dimension_numbers<[1], [0], [0], [1], [0, 0, 1, 1], [], []>} : vector<8x64xbf16>, vector<64x256xbf16>, vector<8x256xf32> -> vector<8x256xf32>
    %171 = arith.addf %168, %170 : vector<8x256xf32>
    %172 = vector.extract_strided_slice %171 {offsets = [0, 0], sizes = [8, 128], strides = [1, 1]} : vector<8x256xf32> to vector<8x128xf32>
    %173 = vector.extract_strided_slice %171 {offsets = [0, 128], sizes = [8, 128], strides = [1, 1]} : vector<8x256xf32> to vector<8x128xf32>
    %cst_46 = arith.constant 5.000000e-01 : f32
    %174 = vector.broadcast %cst_46 : f32 to vector<8x128xf32>
    %175 = arith.mulf %174, %172 : vector<8x128xf32>
    %176 = math.tanh %175 : vector<8x128xf32>
    %cst_47 = arith.constant 5.000000e-01 : f32
    %177 = vector.broadcast %cst_47 : f32 to vector<8x128xf32>
    %178 = arith.mulf %177, %176 : vector<8x128xf32>
    %cst_48 = arith.constant 5.000000e-01 : f32
    %179 = vector.broadcast %cst_48 : f32 to vector<8x128xf32>
    %180 = arith.addf %178, %179 : vector<8x128xf32>
    %cst_49 = arith.constant 5.000000e-01 : f32
    %181 = vector.broadcast %cst_49 : f32 to vector<8x128xf32>
    %182 = arith.mulf %181, %173 : vector<8x128xf32>
    %183 = math.tanh %182 : vector<8x128xf32>
    %cst_50 = arith.constant 5.000000e-01 : f32
    %184 = vector.broadcast %cst_50 : f32 to vector<8x128xf32>
    %185 = arith.mulf %184, %183 : vector<8x128xf32>
    %cst_51 = arith.constant 5.000000e-01 : f32
    %186 = vector.broadcast %cst_51 : f32 to vector<8x128xf32>
    %187 = arith.addf %185, %186 : vector<8x128xf32>
    %188 = math.tanh %173 : vector<8x128xf32>
    %189 = arith.select %12, %187, %188 : vector<8x128xi1>, vector<8x128xf32>
    %190 = vector.extract_strided_slice %180 {offsets = [0, 0], sizes = [8, 64], strides = [1, 1]} : vector<8x128xf32> to vector<8x64xf32>
    %191 = vector.extract_strided_slice %180 {offsets = [0, 64], sizes = [8, 64], strides = [1, 1]} : vector<8x128xf32> to vector<8x64xf32>
    %192 = vector.extract_strided_slice %189 {offsets = [0, 0], sizes = [8, 64], strides = [1, 1]} : vector<8x128xf32> to vector<8x64xf32>
    %193 = vector.extract_strided_slice %189 {offsets = [0, 64], sizes = [8, 64], strides = [1, 1]} : vector<8x128xf32> to vector<8x64xf32>
    %194 = arith.mulf %191, %165 : vector<8x64xf32>
    %195 = arith.mulf %190, %193 : vector<8x64xf32>
    %196 = arith.addf %194, %195 : vector<8x64xf32>
    %197 = math.tanh %196 : vector<8x64xf32>
    %198 = arith.mulf %192, %197 : vector<8x64xf32>
    %199 = vector.extract_strided_slice %6 {offsets = [48, 0], sizes = [8, 256], strides = [1, 1]} : vector<64x256xf32> to vector<8x256xf32>
    %200 = arith.truncf %198 : vector<8x64xf32> to vector<8x64xbf16>
    %cst_52 = arith.constant dense<0.000000e+00> : vector<8x256xf32>
    %201 = tpu.matmul %200, %7, %cst_52 {dimension_numbers = #tpu.dot_dimension_numbers<[1], [0], [0], [1], [0, 0, 1, 1], [], []>} : vector<8x64xbf16>, vector<64x256xbf16>, vector<8x256xf32> -> vector<8x256xf32>
    %202 = arith.addf %199, %201 : vector<8x256xf32>
    %203 = vector.extract_strided_slice %202 {offsets = [0, 0], sizes = [8, 128], strides = [1, 1]} : vector<8x256xf32> to vector<8x128xf32>
    %204 = vector.extract_strided_slice %202 {offsets = [0, 128], sizes = [8, 128], strides = [1, 1]} : vector<8x256xf32> to vector<8x128xf32>
    %cst_53 = arith.constant 5.000000e-01 : f32
    %205 = vector.broadcast %cst_53 : f32 to vector<8x128xf32>
    %206 = arith.mulf %205, %203 : vector<8x128xf32>
    %207 = math.tanh %206 : vector<8x128xf32>
    %cst_54 = arith.constant 5.000000e-01 : f32
    %208 = vector.broadcast %cst_54 : f32 to vector<8x128xf32>
    %209 = arith.mulf %208, %207 : vector<8x128xf32>
    %cst_55 = arith.constant 5.000000e-01 : f32
    %210 = vector.broadcast %cst_55 : f32 to vector<8x128xf32>
    %211 = arith.addf %209, %210 : vector<8x128xf32>
    %cst_56 = arith.constant 5.000000e-01 : f32
    %212 = vector.broadcast %cst_56 : f32 to vector<8x128xf32>
    %213 = arith.mulf %212, %204 : vector<8x128xf32>
    %214 = math.tanh %213 : vector<8x128xf32>
    %cst_57 = arith.constant 5.000000e-01 : f32
    %215 = vector.broadcast %cst_57 : f32 to vector<8x128xf32>
    %216 = arith.mulf %215, %214 : vector<8x128xf32>
    %cst_58 = arith.constant 5.000000e-01 : f32
    %217 = vector.broadcast %cst_58 : f32 to vector<8x128xf32>
    %218 = arith.addf %216, %217 : vector<8x128xf32>
    %219 = math.tanh %204 : vector<8x128xf32>
    %220 = arith.select %12, %218, %219 : vector<8x128xi1>, vector<8x128xf32>
    %221 = vector.extract_strided_slice %211 {offsets = [0, 0], sizes = [8, 64], strides = [1, 1]} : vector<8x128xf32> to vector<8x64xf32>
    %222 = vector.extract_strided_slice %211 {offsets = [0, 64], sizes = [8, 64], strides = [1, 1]} : vector<8x128xf32> to vector<8x64xf32>
    %223 = vector.extract_strided_slice %220 {offsets = [0, 0], sizes = [8, 64], strides = [1, 1]} : vector<8x128xf32> to vector<8x64xf32>
    %224 = vector.extract_strided_slice %220 {offsets = [0, 64], sizes = [8, 64], strides = [1, 1]} : vector<8x128xf32> to vector<8x64xf32>
    %225 = arith.mulf %222, %196 : vector<8x64xf32>
    %226 = arith.mulf %221, %224 : vector<8x64xf32>
    %227 = arith.addf %225, %226 : vector<8x64xf32>
    %228 = math.tanh %227 : vector<8x64xf32>
    %229 = arith.mulf %223, %228 : vector<8x64xf32>
    %230 = vector.extract_strided_slice %6 {offsets = [56, 0], sizes = [8, 256], strides = [1, 1]} : vector<64x256xf32> to vector<8x256xf32>
    %231 = arith.truncf %229 : vector<8x64xf32> to vector<8x64xbf16>
    %cst_59 = arith.constant dense<0.000000e+00> : vector<8x256xf32>
    %232 = tpu.matmul %231, %7, %cst_59 {dimension_numbers = #tpu.dot_dimension_numbers<[1], [0], [0], [1], [0, 0, 1, 1], [], []>} : vector<8x64xbf16>, vector<64x256xbf16>, vector<8x256xf32> -> vector<8x256xf32>
    %233 = arith.addf %230, %232 : vector<8x256xf32>
    %234 = vector.extract_strided_slice %233 {offsets = [0, 0], sizes = [8, 128], strides = [1, 1]} : vector<8x256xf32> to vector<8x128xf32>
    %235 = vector.extract_strided_slice %233 {offsets = [0, 128], sizes = [8, 128], strides = [1, 1]} : vector<8x256xf32> to vector<8x128xf32>
    %cst_60 = arith.constant 5.000000e-01 : f32
    %236 = vector.broadcast %cst_60 : f32 to vector<8x128xf32>
    %237 = arith.mulf %236, %234 : vector<8x128xf32>
    %238 = math.tanh %237 : vector<8x128xf32>
    %cst_61 = arith.constant 5.000000e-01 : f32
    %239 = vector.broadcast %cst_61 : f32 to vector<8x128xf32>
    %240 = arith.mulf %239, %238 : vector<8x128xf32>
    %cst_62 = arith.constant 5.000000e-01 : f32
    %241 = vector.broadcast %cst_62 : f32 to vector<8x128xf32>
    %242 = arith.addf %240, %241 : vector<8x128xf32>
    %cst_63 = arith.constant 5.000000e-01 : f32
    %243 = vector.broadcast %cst_63 : f32 to vector<8x128xf32>
    %244 = arith.mulf %243, %235 : vector<8x128xf32>
    %245 = math.tanh %244 : vector<8x128xf32>
    %cst_64 = arith.constant 5.000000e-01 : f32
    %246 = vector.broadcast %cst_64 : f32 to vector<8x128xf32>
    %247 = arith.mulf %246, %245 : vector<8x128xf32>
    %cst_65 = arith.constant 5.000000e-01 : f32
    %248 = vector.broadcast %cst_65 : f32 to vector<8x128xf32>
    %249 = arith.addf %247, %248 : vector<8x128xf32>
    %250 = math.tanh %235 : vector<8x128xf32>
    %251 = arith.select %12, %249, %250 : vector<8x128xi1>, vector<8x128xf32>
    %252 = vector.extract_strided_slice %242 {offsets = [0, 0], sizes = [8, 64], strides = [1, 1]} : vector<8x128xf32> to vector<8x64xf32>
    %253 = vector.extract_strided_slice %242 {offsets = [0, 64], sizes = [8, 64], strides = [1, 1]} : vector<8x128xf32> to vector<8x64xf32>
    %254 = vector.extract_strided_slice %251 {offsets = [0, 0], sizes = [8, 64], strides = [1, 1]} : vector<8x128xf32> to vector<8x64xf32>
    %255 = vector.extract_strided_slice %251 {offsets = [0, 64], sizes = [8, 64], strides = [1, 1]} : vector<8x128xf32> to vector<8x64xf32>
    %256 = arith.mulf %253, %227 : vector<8x64xf32>
    %257 = arith.mulf %252, %255 : vector<8x64xf32>
    %258 = arith.addf %256, %257 : vector<8x64xf32>
    %259 = math.tanh %258 : vector<8x64xf32>
    %260 = arith.mulf %254, %259 : vector<8x64xf32>
    %c0_66 = arith.constant 0 : index
    %c0_67 = arith.constant 0 : index
    %261 = vector.load %arg4[%c0_66, %c0_67] : memref<64x128xf32, #tpu.memory_space<vmem>>, vector<64x128xf32>
    %cst_68 = arith.constant dense<0.000000e+00> : vector<8x128xf32>
    %262 = tpu.matmul %260, %261, %cst_68 {dimension_numbers = #tpu.dot_dimension_numbers<[1], [0], [0], [1], [0, 0, 1, 1], [], []>} : vector<8x64xf32>, vector<64x128xf32>, vector<8x128xf32> -> vector<8x128xf32>
    %c0_69 = arith.constant 0 : index
    %c0_70 = arith.constant 0 : index
    %263 = vector.load %arg5[%c0_69, %c0_70] : memref<1x128xf32, #tpu.memory_space<vmem>>, vector<1x128xf32>
    %264 = vector.broadcast %263 : vector<1x128xf32> to vector<8x128xf32>
    %265 = arith.addf %262, %264 : vector<8x128xf32>
    %cst_71 = arith.constant 0.000000e+00 : f32
    %266 = vector.broadcast %cst_71 : f32 to vector<8x128xf32>
    %267 = arith.maximumf %265, %266 : vector<8x128xf32>
    %c0_72 = arith.constant 0 : index
    %c0_73 = arith.constant 0 : index
    %268 = vector.load %arg6[%c0_72, %c0_73] : memref<128x128xf32, #tpu.memory_space<vmem>>, vector<128x128xf32>
    %cst_74 = arith.constant dense<0.000000e+00> : vector<8x128xf32>
    %269 = tpu.matmul %267, %268, %cst_74 {dimension_numbers = #tpu.dot_dimension_numbers<[1], [0], [0], [1], [0, 0, 1, 1], [], []>} : vector<8x128xf32>, vector<128x128xf32>, vector<8x128xf32> -> vector<8x128xf32>
    %c0_75 = arith.constant 0 : index
    %c0_76 = arith.constant 0 : index
    %270 = vector.load %arg7[%c0_75, %c0_76] : memref<1x128xf32, #tpu.memory_space<vmem>>, vector<1x128xf32>
    %271 = vector.broadcast %270 : vector<1x128xf32> to vector<8x128xf32>
    %272 = arith.addf %269, %271 : vector<8x128xf32>
    %c0_77 = arith.constant 0 : index
    %c0_78 = arith.constant 0 : index
    %273 = vector.load %arg8[%c0_77, %c0_78] : memref<8x128xf32, #tpu.memory_space<vmem>>, vector<8x128xf32>
    tpu.vector_store %arg8[%c0_77, %c0_78], %272 {strides = array<i32>} : memref<8x128xf32, #tpu.memory_space<vmem>>, vector<8x128xf32>,
    return
  }
}

</mosaic_0001>

<bundles_post_ra>
// kernel: lstm_classifier_forward.1
= control target key start
LH: loop header
LB: loop body
LE: loop exit
PB: predicated region body
PF: predicated region fallthrough
CT: control target
= control target key end

     0   :  { %13 = vsyncpa [#allocation3], 0  ;;  %s1476_s0 = inlined_call_operand.vmem [shape: bf16[8,8,128], index: 0, kind: input, shape index: {}]   ;;  %s1477_s1 = inlined_call_operand.hbm [shape: bf16[128,256], index: 1, kind: input, shape index: {}]   ;;  %s1478_s2 = inlined_call_operand.vmem [shape: bf16[64,256], index: 2, kind: input, shape index: {}]   ;;  %s1479_s3 = inlined_call_operand.vmem [shape: f32[1,256], index: 3, kind: input, shape index: {}]   ;;  %s1480_s4 = inlined_call_operand.hbm [shape: f32[64,128], index: 4, kind: input, shape index: {}]   ;;  %s1481_s5 = inlined_call_operand.vmem [shape: f32[1,128], index: 5, kind: input, shape index: {}]   ;;  %s1482_s6 = inlined_call_operand.hbm [shape: f32[128,128], index: 6, kind: input, shape index: {}]   ;;  %s1483_s7 = inlined_call_operand.vmem [shape: f32[1,128], index: 7, kind: input, shape index: {}]   ;;  %s1484_s8 = inlined_call_operand.vmem [shape: f32[8,128], index: 8, kind: output, shape index: {}]  }
   0x1   :  { %14 = vsyncpa [#allocation5], 0  ;;  %s38_s29 = sshll.u32 %s1480_s4, 4  ;;  %s1179_s30 = smov [#allocation4]   ;;  %s39_s29 = int_to_ptr.hbm [resolvable:$true] %s38_s29 }
   0x2   :  { %s40_s9 = sshll.u32 %s1179_s30, 4  ;;  %s21_s12 = sshll.u32 %s1477_s1, 4  ;;  %s41_s9 = int_to_ptr.vmem [resolvable:$true] %s40_s9  ;;  %s22_s12 = int_to_ptr.hbm [resolvable:$true] %s21_s12 }
   0x3   :  { %s1180_s13 = smov 128   ;;  %s1181_s14 = smov 8  }
   0x4   :  { %46 = dma.hbm_to_vmem [thread:$0]  %s39_s29, 1024, %s41_s9, [#allocation5], %s1180_s13, %s1180_s13, %s1181_s14  }
   0x5   :  { %s1182_s15 = smov [#allocation2]   ;;  %s53_s19 = sshll.u32 %s1482_s6, 4  ;;  %s54_s19 = int_to_ptr.hbm [resolvable:$true] %s53_s19 }
   0x6   :  { %s23_s16 = sshll.u32 %s1182_s15, 4  ;;  %s1183_s4 = smov [#allocation6]   ;;  %s24_s16 = int_to_ptr.vmem [resolvable:$true] %s23_s16 }
   0x7   :  { %29 = dma.hbm_to_vmem [thread:$0]  %s22_s12, 2048, %s24_s16, [#allocation3], %s1180_s13, %s1180_s13, %s1181_s14  }
   0x8   :  { %s55_s20 = sshll.u32 %s1183_s4, 4  ;;  %s56_s20 = int_to_ptr.vmem [resolvable:$true] %s55_s20 }
   0x9   :  { %61 = dma.hbm_to_vmem [thread:$0]  %s54_s19, 2048, %s56_s20, [#allocation5], %s1180_s13, %s1180_s13, %s1181_s14  }
   0xa   :  { %1175 = dma.done.wait [#allocation3], 2048  }
   0xb   :  { %1176 = vsyncadd [#allocation3], 4294965248 }
   0xc   :  { %1177 = dma.done.wait [#allocation5], 3072  }
   0xd   :  { %1178 = vsyncadd [#allocation5], 4294964224  ;;  %v1020_v0 = vld [vmem:[#allocation2 + $0x74] sm:$0xf]  ;;  %v951_v1 = vld [vmem:[#allocation2 + $0x78] sm:$0xf0] }
   0xe   :  { %v1018_v2 = vld [vmem:[#allocation2 + $0x64] sm:$0xf]  ;;  %v954_v3 = vor.u32 %v1020_v0, %v951_v1  ;;  %v943_v4 = vld [vmem:[#allocation2 + $0x68] sm:$0xf0]  ;;  %v1028_v5 = vld [vmem:[%s1478_s2 + $0x34] sm:$0xf] }
   0xf   :  { %v983_v6 = vld [vmem:[%s1478_s2 + $0x38] sm:$0xf0]  ;;  %v1026_v8 = vld [vmem:[%s1478_s2 + $0x24] sm:$0xf]  ;;  %v946_v9 = vor.u32 %v1018_v2, %v943_v4  ;;  %v975_v10 = vld [vmem:[%s1478_s2 + $0x28] sm:$0xf0] }
  0x10   :  { %v1246_v7 = vor.u32 %v1028_v5, %v983_v6  ;;  %240 = vmatpush.bf16.msra.mxu1 %v954_v3  ;;  %v1016_v11 = vld [vmem:[#allocation2 + $0x54] sm:$0xf]  ;;  %v935_v12 = vld [vmem:[#allocation2 + $0x58] sm:$0xf0]  ;;  %v1255_v13 = vor.u32 %v1026_v8, %v975_v10  ;;  %v1014_v17 = vld [vmem:[#allocation2 + $0x44] sm:$0xf] }
  0x11   :  { %v1024_v14 = vld [vmem:[%s1478_s2 + $0x14] sm:$0xf]  ;;  %v967_v15 = vld [vmem:[%s1478_s2 + $0x18] sm:$0xf0]  ;;  %v938_v16 = vor.u32 %v1016_v11, %v935_v12  ;;  %v927_v18 = vld [vmem:[#allocation2 + $0x48] sm:$0xf0] }
  0x12   :  { %341 = vmatpush.bf16.msra.mxu3 %v1246_v7  ;;  %v1264_v19 = vor.u32 %v1024_v14, %v967_v15  ;;  %v1022_v20 = vld [vmem:[%s1478_s2 + $0x4] sm:$0xf]  ;;  %v949_v21 = vld [vmem:[#allocation2 + $0x70] sm:$0xf]  ;;  %v1021_v22 = vld [vmem:[#allocation2 + $0x74] sm:$0xf0]  ;;  %v930_v27 = vor.u32 %v1014_v17, %v927_v18 }
  0x13   :  { %v959_v23 = vld [vmem:[%s1478_s2 + $0x8] sm:$0xf0]  ;;  %v950_v24 = vor.u32 %v1021_v22, %v949_v21  ;;  %v941_v25 = vld [vmem:[#allocation2 + $0x60] sm:$0xf]  ;;  %v1019_v26 = vld [vmem:[#allocation2 + $0x64] sm:$0xf0]  ;;  %v277_v22 = vlaneseq }
  0x14   :  { %241 = vmatpush.bf16.msra.mxu1 %v946_v9  ;;  %v1012_v28 = vld [vmem:[#allocation2 + $0x34] sm:$0xf]  ;;  %v942_v29 = vor.u32 %v1019_v26, %v941_v25  ;;  %v981_v30 = vld [vmem:[%s1478_s2 + $0x30] sm:$0xf]  ;;  %v1029_v31 = vld [vmem:[%s1478_s2 + $0x34] sm:$0xf0]  ;;  %v1279_v33 = vor.u32 %v1022_v20, %v959_v23 }
  0x15   :  { %211 = vmatpush.bf16.msra.mxu0 %v950_v24  ;;  %v919_v32 = vld [vmem:[#allocation2 + $0x38] sm:$0xf0]  ;;  %v1281_v34 = vor.u32 %v1029_v31, %v981_v30  ;;  %v973_v35 = vld [vmem:[%s1478_s2 + $0x20] sm:$0xf]  ;;  %v1027_v36 = vld [vmem:[%s1478_s2 + $0x24] sm:$0xf0] }
  0x16   :  { %342 = vmatpush.bf16.msra.mxu3 %v1255_v13  ;;  %v933_v37 = vld [vmem:[#allocation2 + $0x50] sm:$0xf]  ;;  %v1017_v38 = vld [vmem:[#allocation2 + $0x54] sm:$0xf0]  ;;  %v1290_v39 = vor.u32 %v1027_v36, %v973_v35  ;;  %v922_v40 = vor.u32 %v1012_v28, %v919_v32  ;;  %v1010_v41 = vld [vmem:[#allocation2 + $0x24] sm:$0xf] }
  0x17   :  { %328 = vmatpush.bf16.msra.mxu2 %v1281_v34  ;;  %v965_v42 = vld [vmem:[%s1478_s2 + $0x10] sm:$0xf]  ;;  %v1025_v43 = vld [vmem:[%s1478_s2 + $0x14] sm:$0xf0]  ;;  %v911_v44 = vld [vmem:[#allocation2 + $0x28] sm:$0xf0]  ;;  %v934_v45 = vor.u32 %v1017_v38, %v933_v37 }
  0x18   :  { %242 = vmatpush.bf16.msra.mxu1 %v938_v16  ;;  %v925_v46 = vld [vmem:[#allocation2 + $0x40] sm:$0xf]  ;;  %v1015_v47 = vld [vmem:[#allocation2 + $0x44] sm:$0xf0]  ;;  %v1301_v48 = vor.u32 %v1025_v43, %v965_v42  ;;  %v1184_v49 = vmov 0   ;;  %v914_v50 = vor.u32 %v1010_v41, %v911_v44  ;;  %v1353_v24 = vand.u32 127, %v277_v22 }
  0x19   :  { %212 = vmatpush.bf16.msra.mxu0 %v942_v29  ;;  %v957_v51 = vld [vmem:[%s1478_s2] sm:$0xf]  ;;  %v1023_v52 = vld [vmem:[%s1478_s2 + $0x4] sm:$0xf0]  ;;  %v1008_v53 = vld [vmem:[#allocation2 + $0x14] sm:$0xf]  ;;  %v926_v55 = vor.u32 %v1015_v47, %v925_v46 }
  0x1a   :  { %343 = vmatpush.bf16.msra.mxu3 %v1264_v19  ;;  %v903_v54 = vld [vmem:[#allocation2 + $0x18] sm:$0xf0]  ;;  %v917_v56 = vld [vmem:[#allocation2 + $0x30] sm:$0xf]  ;;  %v1013_v57 = vld [vmem:[#allocation2 + $0x34] sm:$0xf0]  ;;  %v1311_v58 = vor.u32 %v1023_v52, %v957_v51 }
  0x1b   :  { %329 = vmatpush.bf16.msra.mxu2 %v1290_v39  ;;  %v906_v59 = vor.u32 %v1008_v53, %v903_v54  ;;  %v1006_v60 = vld [vmem:[#allocation2 + $0x4] sm:$0xf]  ;;  %v895_v61 = vld [vmem:[#allocation2 + $0x8] sm:$0xf0]  ;;  %v918_v62 = vor.u32 %v1013_v57, %v917_v56  ;;  %v909_v63 = vld [vmem:[#allocation2 + $0x20] sm:$0xf] }
  0x1c   :  { %243 = vmatpush.bf16.msra.mxu1 %v930_v27  ;;  %v1011_v0 = vld [vmem:[#allocation2 + $0x24] sm:$0xf0]  ;;  %v898_v1 = vor.u32 %v1006_v60, %v895_v61  ;;  %v901_v3 = vld [vmem:[#allocation2 + $0x10] sm:$0xf]  ;;  %v1009_v4 = vld [vmem:[#allocation2 + $0x14] sm:$0xf0] }
  0x1d   :  { %213 = vmatpush.bf16.msra.mxu0 %v934_v45  ;;  %v910_v2 = vor.u32 %v1011_v0, %v909_v63  ;;  %v1002_v5 = vld [vmem:[%s1476_s0] sm:$0xff]  ;;  %v902_v6 = vor.u32 %v1009_v4, %v901_v3  ;;  %v1007_v9 = vld [vmem:[#allocation2 + $0x4] sm:$0xf0]  ;;  %vm279_vm0 = vcmp.lt.s32.totalorder %v1353_v24, 64  ;;  %vm320_vm1 = vcmask 523264  }
  0x1e   :  { %344 = vmatpush.bf16.msra.mxu3 %v1279_v33  ;;  %v893_v8 = vld [vmem:[#allocation2] sm:$0xf]  ;;  %v797_v24 = vld [vmem:[#allocation4 + $0x28] sm:$0xff] }
  0x1f   :  { %330 = vmatpush.bf16.msra.mxu2 %v1301_v48  ;;  %v894_v10 = vor.u32 %v1007_v9, %v893_v8  ;;  %v101_v12 = vld [vmem:[%s1479_s3] sm:$0x3]  ;;  %s1185_s3 = smov 64  }
  0x20   :  { %244 = vmatpush.bf16.msra.mxu1 %v922_v40  ;;  %v1350_v14 = vperm.slane %v101_v12, 1  ;;  %v1359_v30 = vperm.slane %v101_v12, 0 }
  0x21   :  { %345 = vmatmul.bf16.vlgmr.msra.gmra.mxu3 %v1184_v49  ;;  %214 = vmatpush.bf16.msra.mxu0 %v926_v55 }
  0x22   :  { %400 = vmatpush.bf16.msrb.mxu3 %v1246_v7 }
  0x23   :  { %331 = vmatpush.bf16.msra.mxu2 %v1311_v58 }
  0x24   :  { %245 = vmatpush.bf16.msra.mxu1 %v914_v50 }
  0x25   :  { %215 = vmatpush.bf16.msra.mxu0 %v918_v62 }
  0x26   :  { %401 = vmatpush.bf16.msrb.mxu3 %v1255_v13  ;;  %332 = vmatmul.bf16.vlgmr.msra.gmra.mxu2 %v1184_v49 }
  0x27   :  { %387 = vmatpush.bf16.msrb.mxu2 %v1281_v34 }
  0x28   :  { %246 = vmatpush.bf16.msra.mxu1 %v906_v59 }
  0x29   :  { %216 = vmatpush.bf16.msra.mxu0 %v910_v2 }
  0x2a   :  { %402 = vmatpush.bf16.msrb.mxu3 %v1264_v19 }
  0x2b   :  { %388 = vmatpush.bf16.msrb.mxu2 %v1290_v39 }
  0x2c   :  { %247 = vmatpush.bf16.msra.mxu1 %v898_v1 }
  0x2d   :  { %217 = vmatpush.bf16.msra.mxu0 %v902_v6 }
  0x2e   :  { %403 = vmatpush.bf16.msrb.mxu3 %v1279_v33 }
  0x2f   :  { %248 = vmatmul.bf16.vlgmr.msra.gmra.mxu1 %v1002_v5  ;;  %389 = vmatpush.bf16.msrb.mxu2 %v1301_v48 }
  0x30   :  { %636 = vmatpush.bf16.msrb.mxu1 %v1246_v7 }
  0x31   :  { %218 = vmatpush.bf16.msra.mxu0 %v894_v10 }
  0x32   :  { %459 = vmatpush.bf16.msra.mxu3 %v1246_v7 }
  0x33   :  { %390 = vmatpush.bf16.msrb.mxu2 %v1311_v58 }
  0x34   :  { %637 = vmatpush.bf16.msrb.mxu1 %v1255_v13  ;;  %219 = vmatmul.bf16.vlgmr.msra.gmra.mxu0 %v1002_v5 }
  0x35   :  { %623 = vmatpush.bf16.msrb.mxu0 %v1281_v34 }
  0x36   :  { %460 = vmatpush.bf16.msra.mxu3 %v1255_v13 }
  0x37   :  { %446 = vmatpush.bf16.msra.mxu2 %v1281_v34 }
  0x38   :  { %638 = vmatpush.bf16.msrb.mxu1 %v1264_v19 }
  0x39   :  { %624 = vmatpush.bf16.msrb.mxu0 %v1290_v39 }
  0x3a   :  { %461 = vmatpush.bf16.msra.mxu3 %v1264_v19 }
  0x3b   :  { %447 = vmatpush.bf16.msra.mxu2 %v1290_v39 }
  0x3c   :  { %639 = vmatpush.bf16.msrb.mxu1 %v1279_v33 }
  0x3d   :  { %625 = vmatpush.bf16.msrb.mxu0 %v1301_v48 }
  0x3e   :  { %462 = vmatpush.bf16.msra.mxu3 %v1279_v33 }
  0x3f   :  { %448 = vmatpush.bf16.msra.mxu2 %v1301_v48 }
  0x40   :  { %754 = vmatpush.bf16.msra.mxu1 %v1246_v7 }
  0x41   :  { %626 = vmatpush.bf16.msrb.mxu0 %v1311_v58 }
  0x43   :  { %449 = vmatpush.bf16.msra.mxu2 %v1311_v58 }
  0x44   :  { %755 = vmatpush.bf16.msra.mxu1 %v1255_v13 }
  0x45   :  { %741 = vmatpush.bf16.msra.mxu0 %v1281_v34 }
  0x48   :  { %756 = vmatpush.bf16.msra.mxu1 %v1264_v19 }
  0x49   :  { %742 = vmatpush.bf16.msra.mxu0 %v1290_v39 }
  0x4c   :  { %757 = vmatpush.bf16.msra.mxu1 %v1279_v33 }
  0x4d   :  { %743 = vmatpush.bf16.msra.mxu0 %v1301_v48 }
  0x51   :  { %744 = vmatpush.bf16.msra.mxu0 %v1311_v58 }
  0xa4   :  { %v346_v11 = vpop.f32.mrf.mxu3 }
  0xa9   :  { %v333_v18 = vpop.f32.mrf.mxu2 }
  0xac   :  { %v348_v15 = vpop.f32.mrf.mxu3  ;;  %v249_v16 = vpop.f32.mrf.mxu1 }
  0xad   :  { %v250_v17 = vadd.f32 %v249_v16, %v1350_v14 }
  0xaf   :  { %v351_v20 = vadd.f32 %v346_v11, %v250_v17  ;;  %v1003_v17 = vld [vmem:[%s1476_s0 + $0x8] sm:$0xff] }
  0xb0   :  { %253 = vmatmul.bf16.gmra.mxu1 %v1003_v17  ;;  %224 = vmatmul.bf16.gmra.mxu0 %v1003_v17 }
  0xb1   :  { %v356_v21 = vmul.f32 0.5, %v351_v20  ;;  %v335_v23 = vpop.f32.mrf.mxu2  ;;  %v220_v31 = vpop.f32.mrf.mxu0 }
  0xb2   :  { %v221_v32 = vadd.f32 %v220_v31, %v1359_v30 }
  0xb3   :  { %1039 = vtanh.f32 %v356_v21 }
  0xb4   :  { %1041 = vtanh.f32 %v351_v20  ;;  %v350_v35 = vadd.f32 %v333_v18, %v221_v32  ;;  %v251_v51 = vpop.f32.mrf.mxu1 }
  0xb5   :  { %v252_v52 = vadd.f32 %v251_v51, %v1350_v14 }
  0xb6   :  { %v352_v36 = vmul.f32 0.5, %v350_v35 }
  0xb8   :  { %1043 = vtanh.f32 %v352_v36 }
  0xb9   :  { %v1040_v25 = vpop.eup %1039  ;;  %v222_v1 = vpop.f32.mrf.mxu0 }
  0xba   :  { %v358_v26 = vmul.f32 0.5, %v1040_v25  ;;  %v1042_v28 = vpop.eup %1041  ;;  %v223_v2 = vadd.f32 %v222_v1, %v1359_v30 }
  0xbc   :  { %v359_v27 = vadd.f32 0.5, %v358_v26 }
  0xbe   :  { %v361_v29 = vsel %vm279_vm0, %v359_v27, %v1042_v28  ;;  %v1044_v37 = vpop.eup %1043 }
  0xbf   :  { %364 = vrot.lane.b32.xlu0 %v361_v29, %s1185_s3  ;;  %v354_v38 = vmul.f32 0.5, %v1044_v37 }
  0xc1   :  { %v355_v40 = vadd.f32 0.5, %v354_v38 }
  0xc3   :  { %v362_v43 = vmul.f32 0.0, %v355_v40 }
 0x12d   :  { %v254_v22 = vpop.f32.mrf.mxu1 }
 0x12e   :  { %v255_v23 = vadd.f32 %v254_v22, %v1350_v14 }
 0x131   :  { %v365_v41 = vpop.permute.xlu0 %364 }
 0x132   :  { %v367_v42 = vmul.f32 %v365_v41, %v355_v40  ;;  %v225_v40 = vpop.f32.mrf.mxu0 }
 0x133   :  { %v226_v41 = vadd.f32 %v225_v40, %v1359_v30 }
 0x134   :  { %369 = vrot.lane.b32.xlu0 %v367_v42, %s1185_s3 }
 0x1a6   :  { %v370_v44 = vpop.permute.xlu0 %369 }
 0x1a7   :  { %v372_v45 = vadd.f32 %v370_v44, %v362_v43 }
 0x1a9   :  { %1045 = vtanh.f32 %v372_v45 }
 0x1af   :  { %v1046_v46 = vpop.eup %1045 }
 0x1b0   :  { %375 = vrot.lane.b32.xlu1 %v1046_v46, %s1185_s3 }
 0x222   :  { %v376_v47 = vpop.permute.xlu1 %375 }
 0x223   :  { %v378_v49 = vmul.f32 %v376_v47, %v361_v29 }
 0x225   :  { %v379_v50 = vpack.c.bf16 %v378_v49, %v378_v49 }
 0x227   :  { %987 = vmatmul.msk.bf16.vlgmr.msrb.gmra.mxu2 %vm320_vm1, %v379_v50  ;;  %988 = vmatmul.msk.bf16.vlgmr.msrb.gmra.mxu3 %vm320_vm1, %v379_v50 }
 0x228   :  { %518 = vmatpush.bf16.msrb.mxu3 %v1246_v7  ;;  %505 = vmatpush.bf16.msrb.mxu2 %v1281_v34 }
 0x22c   :  { %519 = vmatpush.bf16.msrb.mxu3 %v1255_v13  ;;  %506 = vmatpush.bf16.msrb.mxu2 %v1290_v39 }
 0x230   :  { %520 = vmatpush.bf16.msrb.mxu3 %v1264_v19  ;;  %507 = vmatpush.bf16.msrb.mxu2 %v1301_v48 }
 0x234   :  { %521 = vmatpush.bf16.msrb.mxu3 %v1279_v33  ;;  %508 = vmatpush.bf16.msrb.mxu2 %v1311_v58 }
 0x2aa   :  { %v392_v53 = vpop.f32.mrf.mxu2  ;;  %v405_v54 = vpop.f32.mrf.mxu3 }
 0x2ab   :  { %v410_v55 = vadd.f32 %v405_v54, %v252_v52  ;;  %v409_v3 = vadd.f32 %v392_v53, %v223_v2 }
 0x2ad   :  { %v415_v56 = vmul.f32 0.5, %v410_v55  ;;  %v411_v4 = vmul.f32 0.5, %v409_v3 }
 0x2af   :  { %1047 = vtanh.f32 %v415_v56 }
 0x2b0   :  { %1049 = vtanh.f32 %v410_v55 }
 0x2b1   :  { %1051 = vtanh.f32 %v411_v4 }
 0x2b2   :  { %v394_v57 = vpop.f32.mrf.mxu2  ;;  %v407_v59 = vpop.f32.mrf.mxu3 }
 0x2b3   :  { %v256_v57 = vpop.f32.mrf.mxu1 }
 0x2b4   :  { %v257_v59 = vadd.f32 %v256_v57, %v1350_v14 }
 0x2b5   :  { %v1048_v60 = vpop.eup %1047 }
 0x2b6   :  { %v417_v61 = vmul.f32 0.5, %v1048_v60  ;;  %v1050_v63 = vpop.eup %1049 }
 0x2b7   :  { %v1052_v5 = vpop.eup %1051 }
 0x2b8   :  { %v418_v62 = vadd.f32 0.5, %v417_v61  ;;  %v413_v6 = vmul.f32 0.5, %v1052_v5 }
 0x2ba   :  { %v420_v0 = vsel %vm279_vm0, %v418_v62, %v1050_v63  ;;  %v414_v8 = vadd.f32 0.5, %v413_v6 }
 0x2bb   :  { %423 = vrot.lane.b32.xlu1 %v420_v0, %s1185_s3 }
 0x2bc   :  { %v421_v11 = vmul.f32 %v414_v8, %v372_v45 }
 0x32d   :  { %v424_v9 = vpop.permute.xlu1 %423 }
 0x32e   :  { %v426_v10 = vmul.f32 %v424_v9, %v414_v8 }
 0x330   :  { %428 = vrot.lane.b32.xlu2 %v426_v10, %s1185_s3 }
 0x38a   :  { %v429_v12 = vpop.permute.xlu2 %428 }
 0x38b   :  { %v431_v15 = vadd.f32 %v429_v12, %v421_v11 }
 0x38d   :  { %1053 = vtanh.f32 %v431_v15 }
 0x393   :  { %v1054_v16 = vpop.eup %1053 }
 0x394   :  { %434 = vrot.lane.b32.xlu2 %v1054_v16, %s1185_s3 }
 0x3ee   :  { %v435_v18 = vpop.permute.xlu2 %434 }
 0x3ef   :  { %v437_v20 = vmul.f32 %v435_v18, %v420_v0 }
 0x3f1   :  { %v438_v21 = vpack.c.bf16 %v437_v20, %v437_v20 }
 0x3f3   :  { %989 = vmatmul.msk.bf16.vlgmr.msra.gmra.mxu2 %vm320_vm1, %v438_v21  ;;  %990 = vmatmul.msk.bf16.vlgmr.msra.gmra.mxu3 %vm320_vm1, %v438_v21 }
 0x3f4   :  { %577 = vmatpush.bf16.msra.mxu3 %v1246_v7  ;;  %564 = vmatpush.bf16.msra.mxu2 %v1281_v34 }
 0x3f8   :  { %578 = vmatpush.bf16.msra.mxu3 %v1255_v13  ;;  %565 = vmatpush.bf16.msra.mxu2 %v1290_v39 }
 0x3fc   :  { %579 = vmatpush.bf16.msra.mxu3 %v1264_v19  ;;  %566 = vmatpush.bf16.msra.mxu2 %v1301_v48 }
 0x400   :  { %580 = vmatpush.bf16.msra.mxu3 %v1279_v33  ;;  %567 = vmatpush.bf16.msra.mxu2 %v1311_v58 }
 0x476   :  { %v451_v25 = vpop.f32.mrf.mxu2  ;;  %v464_v26 = vpop.f32.mrf.mxu3 }
 0x477   :  { %v469_v27 = vadd.f32 %v464_v26, %v255_v23  ;;  %v468_v42 = vadd.f32 %v451_v25, %v226_v41 }
 0x479   :  { %v474_v28 = vmul.f32 0.5, %v469_v27  ;;  %v470_v43 = vmul.f32 0.5, %v468_v42 }
 0x47b   :  { %1055 = vtanh.f32 %v474_v28 }
 0x47c   :  { %1057 = vtanh.f32 %v469_v27 }
 0x47d   :  { %1059 = vtanh.f32 %v470_v43 }
 0x47e   :  { %v453_v29 = vpop.f32.mrf.mxu2  ;;  %v466_v31 = vpop.f32.mrf.mxu3 }
 0x481   :  { %v1056_v32 = vpop.eup %1055 }
 0x482   :  { %v476_v35 = vmul.f32 0.5, %v1056_v32  ;;  %v1058_v37 = vpop.eup %1057 }
 0x483   :  { %v1060_v44 = vpop.eup %1059 }
 0x484   :  { %v477_v36 = vadd.f32 0.5, %v476_v35  ;;  %v472_v45 = vmul.f32 0.5, %v1060_v44 }
 0x486   :  { %v479_v38 = vsel %vm279_vm0, %v477_v36, %v1058_v37  ;;  %v473_v46 = vadd.f32 0.5, %v472_v45 }
 0x487   :  { %482 = vrot.lane.b32.xlu0 %v479_v38, %s1185_s3 }
 0x488   :  { %v480_v50 = vmul.f32 %v473_v46, %v431_v15  ;;  %v1004_v15 = vld [vmem:[%s1476_s0 + $0x10] sm:$0xff] }
 0x489   :  { %258 = vmatmul.bf16.gmra.mxu1 %v1004_v15  ;;  %229 = vmatmul.bf16.gmra.mxu0 %v1004_v15 }
 0x4f9   :  { %v483_v47 = vpop.permute.xlu0 %482 }
 0x4fa   :  { %v485_v49 = vmul.f32 %v483_v47, %v473_v46  ;;  %v1005_v47 = vld [vmem:[%s1476_s0 + $0x18] sm:$0xff] }
 0x4fb   :  { %263 = vmatmul.bf16.gmra.mxu1 %v1005_v47  ;;  %234 = vmatmul.bf16.gmra.mxu0 %v1005_v47 }
 0x4fc   :  { %487 = vrot.lane.b32.xlu1 %v485_v49, %s1185_s3 }
 0x506   :  { %v259_v20 = vpop.f32.mrf.mxu1 }
 0x507   :  { %v260_v21 = vadd.f32 %v259_v20, %v1350_v14 }
 0x50e   :  { %v261_v57 = vpop.f32.mrf.mxu1 }
 0x56e   :  { %v488_v51 = vpop.permute.xlu1 %487 }
 0x56f   :  { %v490_v52 = vadd.f32 %v488_v51, %v480_v50 }
 0x571   :  { %1061 = vtanh.f32 %v490_v52 }
 0x577   :  { %v1062_v53 = vpop.eup %1061 }
 0x578   :  { %493 = vrot.lane.b32.xlu2 %v1062_v53, %s1185_s3 }
 0x5d2   :  { %v494_v54 = vpop.permute.xlu2 %493 }
 0x5d3   :  { %v496_v55 = vmul.f32 %v494_v54, %v479_v38 }
 0x5d5   :  { %v497_v56 = vpack.c.bf16 %v496_v55, %v496_v55 }
 0x5d7   :  { %991 = vmatmul.msk.bf16.vlgmr.msrb.gmra.mxu2 %vm320_vm1, %v497_v56  ;;  %992 = vmatmul.msk.bf16.vlgmr.msrb.gmra.mxu3 %vm320_vm1, %v497_v56 }
 0x5d8   :  { %695 = vmatpush.bf16.msrb.mxu3 %v1246_v7  ;;  %682 = vmatpush.bf16.msrb.mxu2 %v1281_v34 }
 0x5dc   :  { %696 = vmatpush.bf16.msrb.mxu3 %v1255_v13  ;;  %683 = vmatpush.bf16.msrb.mxu2 %v1290_v39 }
 0x5e0   :  { %697 = vmatpush.bf16.msrb.mxu3 %v1264_v19  ;;  %684 = vmatpush.bf16.msrb.mxu2 %v1301_v48  ;;  %v227_v48 = vpop.f32.mrf.mxu0 }
 0x5e4   :  { %698 = vmatpush.bf16.msrb.mxu3 %v1279_v33  ;;  %685 = vmatpush.bf16.msrb.mxu2 %v1311_v58  ;;  %v228_v58 = vadd.f32 %v227_v48, %v1359_v30 }
 0x5e8   :  { %v230_v37 = vpop.f32.mrf.mxu0 }
 0x5e9   :  { %v231_v38 = vadd.f32 %v230_v37, %v1359_v30 }
 0x5f0   :  { %v232_v56 = vpop.f32.mrf.mxu0 }
 0x65a   :  { %v510_v60 = vpop.f32.mrf.mxu2  ;;  %v523_v61 = vpop.f32.mrf.mxu3 }
 0x65b   :  { %v528_v7 = vadd.f32 %v523_v61, %v257_v59  ;;  %v527_v1 = vadd.f32 %v510_v60, %v228_v58  ;;  %v235_v59 = vpop.f32.mrf.mxu0  ;;  %v264_v60 = vpop.f32.mrf.mxu1 }
 0x65d   :  { %v533_v62 = vmul.f32 0.5, %v528_v7  ;;  %v529_v2 = vmul.f32 0.5, %v527_v1 }
 0x65f   :  { %1063 = vtanh.f32 %v533_v62  ;;  %v262_v62 = vadd.f32 %v261_v57, %v1350_v14 }
 0x660   :  { %1065 = vtanh.f32 %v528_v7 }
 0x661   :  { %1067 = vtanh.f32 %v529_v2 }
 0x662   :  { %v512_v34 = vpop.f32.mrf.mxu2  ;;  %v525_v13 = vpop.f32.mrf.mxu3 }
 0x663   :  { %v1435_v61 = vpop.f32.mrf.mxu0  ;;  %v1437_v7 = vpop.f32.mrf.mxu1 }
 0x665   :  { %v1064_v39 = vpop.eup %1063 }
 0x666   :  { %v535_v63 = vmul.f32 0.5, %v1064_v39  ;;  %v1066_v0 = vpop.eup %1065 }
 0x667   :  { %v1068_v3 = vpop.eup %1067 }
 0x668   :  { %v536_v19 = vadd.f32 0.5, %v535_v63  ;;  %v531_v4 = vmul.f32 0.5, %v1068_v3  ;;  %v233_v3 = vadd.f32 %v232_v56, %v1359_v30 }
 0x66a   :  { %v538_v33 = vsel %vm279_vm0, %v536_v19, %v1066_v0  ;;  %v532_v5 = vadd.f32 0.5, %v531_v4 }
 0x66b   :  { %541 = vrot.lane.b32.xlu0 %v538_v33, %s1185_s3 }
 0x66c   :  { %v539_v9 = vmul.f32 %v532_v5, %v490_v52 }
 0x6dd   :  { %v542_v6 = vpop.permute.xlu0 %541 }
 0x6de   :  { %v544_v8 = vmul.f32 %v542_v6, %v532_v5 }
 0x6e0   :  { %546 = vrot.lane.b32.xlu1 %v544_v8, %s1185_s3 }
 0x752   :  { %v547_v10 = vpop.permute.xlu1 %546 }
 0x753   :  { %v549_v11 = vadd.f32 %v547_v10, %v539_v9 }
 0x755   :  { %1069 = vtanh.f32 %v549_v11 }
 0x75b   :  { %v1070_v12 = vpop.eup %1069 }
 0x75c   :  { %552 = vrot.lane.b32.xlu2 %v1070_v12, %s1185_s3 }
 0x7b6   :  { %v553_v16 = vpop.permute.xlu2 %552 }
 0x7b7   :  { %v555_v17 = vmul.f32 %v553_v16, %v538_v33 }
 0x7b9   :  { %v556_v18 = vpack.c.bf16 %v555_v17, %v555_v17 }
 0x7bb   :  { %993 = vmatmul.msk.bf16.vlgmr.msra.gmra.mxu2 %vm320_vm1, %v556_v18  ;;  %994 = vmatmul.msk.bf16.vlgmr.msra.gmra.mxu3 %vm320_vm1, %v556_v18 }
 0x83e   :  { %v569_v22 = vpop.f32.mrf.mxu2  ;;  %v582_v23 = vpop.f32.mrf.mxu3 }
 0x83f   :  { %v587_v25 = vadd.f32 %v582_v23, %v260_v21  ;;  %v586_v40 = vadd.f32 %v569_v22, %v231_v38  ;;  %v265_v22 = vadd.f32 %v264_v60, %v1350_v14  ;;  %v236_v23 = vadd.f32 %v235_v59, %v1359_v30 }
 0x841   :  { %v592_v26 = vmul.f32 0.5, %v587_v25  ;;  %v588_v41 = vmul.f32 0.5, %v586_v40 }
 0x843   :  { %1071 = vtanh.f32 %v592_v26 }
 0x844   :  { %1073 = vtanh.f32 %v587_v25 }
 0x845   :  { %1075 = vtanh.f32 %v588_v41 }
 0x846   :  { %v571_v27 = vpop.f32.mrf.mxu2  ;;  %v584_v28 = vpop.f32.mrf.mxu3 }
 0x849   :  { %v1072_v29 = vpop.eup %1071 }
 0x84a   :  { %v594_v31 = vmul.f32 0.5, %v1072_v29  ;;  %v1074_v35 = vpop.eup %1073 }
 0x84b   :  { %v1076_v42 = vpop.eup %1075 }
 0x84c   :  { %v595_v32 = vadd.f32 0.5, %v594_v31  ;;  %v590_v43 = vmul.f32 0.5, %v1076_v42 }
 0x84e   :  { %v597_v36 = vsel %vm279_vm0, %v595_v32, %v1074_v35  ;;  %v591_v44 = vadd.f32 0.5, %v590_v43 }
 0x84f   :  { %600 = vrot.lane.b32.xlu0 %v597_v36, %s1185_s3 }
 0x850   :  { %v598_v49 = vmul.f32 %v591_v44, %v549_v11 }
 0x8c1   :  { %v601_v45 = vpop.permute.xlu0 %600 }
 0x8c2   :  { %v603_v46 = vmul.f32 %v601_v45, %v591_v44 }
 0x8c4   :  { %605 = vrot.lane.b32.xlu1 %v603_v46, %s1185_s3 }
 0x936   :  { %v606_v50 = vpop.permute.xlu1 %605 }
 0x937   :  { %v608_v51 = vadd.f32 %v606_v50, %v598_v49 }
 0x939   :  { %1077 = vtanh.f32 %v608_v51 }
 0x93f   :  { %v1078_v52 = vpop.eup %1077 }
 0x940   :  { %611 = vrot.lane.b32.xlu2 %v1078_v52, %s1185_s3 }
 0x99a   :  { %v612_v53 = vpop.permute.xlu2 %611 }
 0x99b   :  { %v614_v54 = vmul.f32 %v612_v53, %v597_v36 }
 0x99d   :  { %v615_v55 = vpack.c.bf16 %v614_v54, %v614_v54 }
 0x99f   :  { %995 = vmatmul.msk.bf16.vlgmr.msrb.gmra.mxu0 %vm320_vm1, %v615_v55  ;;  %996 = vmatmul.msk.bf16.vlgmr.msrb.gmra.mxu1 %vm320_vm1, %v615_v55  ;;  %v267_v55 = vadd.f32 %v1437_v7, %v1350_v14  ;;  %v238_v14 = vadd.f32 %v1435_v61, %v1359_v30  ;;  %v794_v30 = vld [vmem:[#allocation4 + $0x10] sm:$0xff]  ;;  %v793_v61 = vld [vmem:[#allocation4 + $0x8] sm:$0xff] }
 0xa1c   :  { %v628_v34 = vpop.f32.mrf.mxu0  ;;  %v641_v13 = vpop.f32.mrf.mxu1 }
 0xa1d   :  { %v646_v39 = vadd.f32 %v641_v13, %v262_v62  ;;  %v645_v4 = vadd.f32 %v628_v34, %v233_v3 }
 0xa1f   :  { %v651_v63 = vmul.f32 0.5, %v646_v39  ;;  %v647_v5 = vmul.f32 0.5, %v645_v4  ;;  %v799_v4 = vld [vmem:[#allocation4 + $0x38] sm:$0xff] }
 0xa20   :  { %815 = vmatpush.msra.mxu2 %v799_v4 }
 0xa21   :  { %1079 = vtanh.f32 %v651_v63 }
 0xa22   :  { %1081 = vtanh.f32 %v646_v39 }
 0xa23   :  { %1083 = vtanh.f32 %v647_v5  ;;  %v798_v5 = vld [vmem:[#allocation4 + $0x30] sm:$0xff] }
 0xa24   :  { %v630_v19 = vpop.f32.mrf.mxu0  ;;  %v643_v0 = vpop.f32.mrf.mxu1  ;;  %816 = vmatpush.msra.mxu2 %v798_v5 }
 0xa26   :  { %817 = vmatpush.msra.mxu2 %v797_v24 }
 0xa27   :  { %v1080_v33 = vpop.eup %1079 }
 0xa28   :  { %v653_v48 = vmul.f32 0.5, %v1080_v33  ;;  %v1082_v1 = vpop.eup %1081 }
 0xa29   :  { %v1084_v6 = vpop.eup %1083 }
 0xa2a   :  { %v654_v58 = vadd.f32 0.5, %v653_v48  ;;  %v649_v8 = vmul.f32 0.5, %v1084_v6  ;;  %v796_v6 = vld [vmem:[#allocation4 + $0x20] sm:$0xff] }
 0xa2b   :  { %818 = vmatpush.msra.mxu2 %v796_v6 }
 0xa2c   :  { %v656_v2 = vsel %vm279_vm0, %v654_v58, %v1082_v1  ;;  %v650_v9 = vadd.f32 0.5, %v649_v8  ;;  %v795_v8 = vld [vmem:[#allocation4 + $0x18] sm:$0xff] }
 0xa2d   :  { %659 = vrot.lane.b32.xlu0 %v656_v2, %s1185_s3  ;;  %819 = vmatpush.msra.mxu2 %v795_v8 }
 0xa2e   :  { %v657_v12 = vmul.f32 %v650_v9, %v608_v51 }
 0xa2f   :  { %820 = vmatpush.msra.mxu2 %v794_v30 }
 0xa31   :  { %821 = vmatpush.msra.mxu2 %v793_v61 }
 0xa9f   :  { %v660_v10 = vpop.permute.xlu0 %659 }
 0xaa0   :  { %v662_v11 = vmul.f32 %v660_v10, %v650_v9 }
 0xaa2   :  { %664 = vrot.lane.b32.xlu1 %v662_v11, %s1185_s3 }
 0xb14   :  { %v665_v15 = vpop.permute.xlu1 %664 }
 0xb15   :  { %v667_v16 = vadd.f32 %v665_v15, %v657_v12  ;;  %v792_v15 = vld [vmem:[#allocation4] sm:$0xff] }
 0xb16   :  { %822 = vmatpush.msra.mxu2 %v792_v15 }
 0xb17   :  { %1085 = vtanh.f32 %v667_v16 }
 0xb1d   :  { %v1086_v17 = vpop.eup %1085 }
 0xb1e   :  { %670 = vrot.lane.b32.xlu2 %v1086_v17, %s1185_s3  ;;  %v842_v17 = vld [vmem:[#allocation6 + $0x70] sm:$0xff] }
 0xb78   :  { %v671_v18 = vpop.permute.xlu2 %670 }
 0xb79   :  { %v673_v20 = vmul.f32 %v671_v18, %v656_v2  ;;  %v841_v18 = vld [vmem:[#allocation6 + $0x68] sm:$0xff] }
 0xb7b   :  { %v674_v21 = vpack.c.bf16 %v673_v20, %v673_v20  ;;  %v840_v20 = vld [vmem:[#allocation6 + $0x60] sm:$0xff] }
 0xb7d   :  { %997 = vmatmul.msk.bf16.vlgmr.msrb.gmra.mxu2 %vm320_vm1, %v674_v21  ;;  %998 = vmatmul.msk.bf16.vlgmr.msrb.gmra.mxu3 %vm320_vm1, %v674_v21  ;;  %v839_v21 = vld [vmem:[#allocation6 + $0x58] sm:$0xff] }
 0xc00   :  { %v687_v25 = vpop.f32.mrf.mxu2  ;;  %v700_v26 = vpop.f32.mrf.mxu3 }
 0xc01   :  { %v704_v27 = vadd.f32 %v687_v25, %v236_v23  ;;  %v705_v28 = vadd.f32 %v700_v26, %v265_v22  ;;  %v838_v22 = vld [vmem:[#allocation6 + $0x50] sm:$0xff]  ;;  %v837_v23 = vld [vmem:[#allocation6 + $0x48] sm:$0xff]  ;;  %v836_v25 = vld [vmem:[#allocation6 + $0x40] sm:$0xff] }
 0xc02   :  { %v835_v26 = vld [vmem:[#allocation6 + $0x38] sm:$0xff] }
 0xc03   :  { %v710_v29 = vmul.f32 0.5, %v705_v28  ;;  %v706_v41 = vmul.f32 0.5, %v704_v27  ;;  %v834_v27 = vld [vmem:[#allocation6 + $0x30] sm:$0xff] }
 0xc05   :  { %1087 = vtanh.f32 %v710_v29  ;;  %v832_v29 = vld [vmem:[#allocation6 + $0x20] sm:$0xff] }
 0xc06   :  { %1089 = vtanh.f32 %v705_v28  ;;  %v833_v28 = vld [vmem:[#allocation6 + $0x28] sm:$0xff] }
 0xc07   :  { %1091 = vtanh.f32 %v706_v41 }
 0xc08   :  { %v689_v31 = vpop.f32.mrf.mxu2  ;;  %v702_v32 = vpop.f32.mrf.mxu3 }
 0xc09   :  { %v831_v31 = vld [vmem:[#allocation6 + $0x18] sm:$0xff] }
 0xc0b   :  { %v1088_v35 = vpop.eup %1087 }
 0xc0c   :  { %v712_v36 = vmul.f32 0.5, %v1088_v35  ;;  %v1090_v38 = vpop.eup %1089 }
 0xc0d   :  { %v1092_v42 = vpop.eup %1091 }
 0xc0e   :  { %v713_v37 = vadd.f32 0.5, %v712_v36  ;;  %v708_v43 = vmul.f32 0.5, %v1092_v42  ;;  %v830_v36 = vld [vmem:[#allocation6 + $0x10] sm:$0xff] }
 0xc10   :  { %v715_v40 = vsel %vm279_vm0, %v713_v37, %v1090_v38  ;;  %v709_v44 = vadd.f32 0.5, %v708_v43  ;;  %v829_v37 = vld [vmem:[#allocation6 + $0x8] sm:$0xff]  ;;  %v828_v38 = vld [vmem:[#allocation6] sm:$0xff] }
 0xc11   :  { %718 = vrot.lane.b32.xlu0 %v715_v40, %s1185_s3 }
 0xc12   :  { %v716_v47 = vmul.f32 %v709_v44, %v667_v16  ;;  %v843_v16 = vld [vmem:[#allocation6 + $0x78] sm:$0xff] }
 0xc13   :  { %848 = vmatpush.msra.mxu3 %v843_v16 }
 0xc15   :  { %849 = vmatpush.msra.mxu3 %v842_v17 }
 0xc17   :  { %850 = vmatpush.msra.mxu3 %v841_v18 }
 0xc19   :  { %851 = vmatpush.msra.mxu3 %v840_v20 }
 0xc1b   :  { %852 = vmatpush.msra.mxu3 %v839_v21 }
 0xc1d   :  { %853 = vmatpush.msra.mxu3 %v838_v22 }
 0xc1f   :  { %854 = vmatpush.msra.mxu3 %v837_v23 }
 0xc21   :  { %855 = vmatpush.msra.mxu3 %v836_v25 }
 0xc23   :  { %856 = vmatpush.msra.mxu3 %v835_v26 }
 0xc25   :  { %857 = vmatpush.msra.mxu3 %v834_v27 }
 0xc27   :  { %858 = vmatpush.msra.mxu3 %v833_v28 }
 0xc29   :  { %859 = vmatpush.msra.mxu3 %v832_v29 }
 0xc2b   :  { %860 = vmatpush.msra.mxu3 %v831_v31 }
 0xc2d   :  { %861 = vmatpush.msra.mxu3 %v830_v36 }
 0xc2f   :  { %862 = vmatpush.msra.mxu3 %v829_v37 }
 0xc31   :  { %863 = vmatpush.msra.mxu3 %v828_v38 }
 0xc83   :  { %v719_v45 = vpop.permute.xlu0 %718 }
 0xc84   :  { %v721_v46 = vmul.f32 %v719_v45, %v709_v44  ;;  %v1038_v44 = vld [vmem:[%s1483_s7] ss:$0 sm:$0xff] }
 0xc86   :  { %723 = vrot.lane.b32.xlu1 %v721_v46, %s1185_s3 }
 0xcf8   :  { %v724_v49 = vpop.permute.xlu1 %723 }
 0xcf9   :  { %v726_v50 = vadd.f32 %v724_v49, %v716_v47 }
 0xcfb   :  { %1093 = vtanh.f32 %v726_v50 }
 0xd01   :  { %v1094_v51 = vpop.eup %1093 }
 0xd02   :  { %729 = vrot.lane.b32.xlu2 %v1094_v51, %s1185_s3 }
 0xd5c   :  { %v730_v52 = vpop.permute.xlu2 %729 }
 0xd5d   :  { %v732_v53 = vmul.f32 %v730_v52, %v715_v40  ;;  %v1037_v40 = vld [vmem:[%s1481_s5] ss:$0 sm:$0xff] }
 0xd5f   :  { %v733_v54 = vpack.c.bf16 %v732_v53, %v732_v53 }
 0xd61   :  { %999 = vmatmul.msk.bf16.vlgmr.msra.gmra.mxu0 %vm320_vm1, %v733_v54  ;;  %1000 = vmatmul.msk.bf16.vlgmr.msra.gmra.mxu1 %vm320_vm1, %v733_v54 }
 0xdde   :  { %v746_v56 = vpop.f32.mrf.mxu0  ;;  %v759_v57 = vpop.f32.mrf.mxu1 }
 0xddf   :  { %v764_v59 = vadd.f32 %v759_v57, %v267_v55  ;;  %v763_v7 = vadd.f32 %v746_v56, %v238_v14 }
 0xde1   :  { %v769_v60 = vmul.f32 0.5, %v764_v59  ;;  %v765_v33 = vmul.f32 0.5, %v763_v7 }
 0xde3   :  { %1095 = vtanh.f32 %v769_v60 }
 0xde4   :  { %1097 = vtanh.f32 %v764_v59 }
 0xde5   :  { %1099 = vtanh.f32 %v765_v33 }
 0xde6   :  { %v748_v62 = vpop.f32.mrf.mxu0  ;;  %v761_v34 = vpop.f32.mrf.mxu1 }
 0xde9   :  { %v1096_v13 = vpop.eup %1095 }
 0xdea   :  { %v771_v39 = vmul.f32 0.5, %v1096_v13  ;;  %v1098_v19 = vpop.eup %1097 }
 0xdeb   :  { %v1100_v48 = vpop.eup %1099 }
 0xdec   :  { %v772_v63 = vadd.f32 0.5, %v771_v39  ;;  %v767_v58 = vmul.f32 0.5, %v1100_v48 }
 0xdee   :  { %v774_v0 = vsel %vm279_vm0, %v772_v63, %v1098_v19  ;;  %v768_v1 = vadd.f32 0.5, %v767_v58 }
 0xdef   :  { %777 = vrot.lane.b32.xlu0 %v774_v0, %s1185_s3 }
 0xdf0   :  { %v775_v9 = vmul.f32 %v768_v1, %v726_v50 }
 0xe61   :  { %v778_v2 = vpop.permute.xlu0 %777 }
 0xe62   :  { %v780_v3 = vmul.f32 %v778_v2, %v768_v1 }
 0xe64   :  { %782 = vrot.lane.b32.xlu1 %v780_v3, %s1185_s3 }
 0xed6   :  { %v783_v10 = vpop.permute.xlu1 %782 }
 0xed7   :  { %v785_v11 = vadd.f32 %v783_v10, %v775_v9 }
 0xed9   :  { %1101 = vtanh.f32 %v785_v11 }
 0xedf   :  { %v1102_v12 = vpop.eup %1101 }
 0xee0   :  { %788 = vrot.lane.b32.xlu2 %v1102_v12, %s1185_s3 }
 0xf3a   :  { %v789_v32 = vpop.permute.xlu2 %788 }
 0xf3b   :  { %v791_v35 = vmul.f32 %v789_v32, %v774_v0 }
 0xf3d   :  { %1001 = vmatmul.msk.f32.vlgmr.msra.gmra.mxu2 %vm320_vm1, %v791_v35 }
 0xfc0   :  { %v824_v41 = vpop.f32.mrf.mxu2 }
 0xfc1   :  { %v825_v42 = vadd.f32 %v1037_v40, %v824_v41 }
 0xfc3   :  { %v827_v43 = vmax.f32 %v825_v42, 0.0 }
 0xfc5   :  { %864 = vmatmul.f32.vlgmr.msra.gmra.mxu3 %v827_v43 }
0x1048   :  { %v865_v45 = vpop.f32.mrf.mxu3 }
0x1049   :  { %v866_v46 = vadd.f32 %v1038_v44, %v865_v45 }
0x104b   :  { %868 = vst [vmem:[%s1484_s8] sm:$0xff] %v866_v46 }
0x104c   :  { %873 = vsyncpa [#allocation3], 1 }
0x104d   :  { %874 = vsyncpa [#allocation5], 1 }

</bundles_post_ra>
